<compile_context>
chip_gen: v7x
topology: tpu7x:2x2x1
jax: 0.10.0
libtpu: 0.0.40
codegen_flags: <defaults>
</compile_context>

<pallas_src>
import jax
import jax.numpy as jnp
from jax import lax
from jax.experimental import pallas as pl
from jax.experimental.pallas import tpu as pltpu

HIDDEN = 512
EPS = 1e-5


def _mlp_math(x, w1, b1, w2, b2, w3, b3):
    """Shared math: the kernel body and the pure-JAX reference use the same ops,
    so they have identical bf16-operand / f32-accumulation numerics."""
    h1 = jnp.dot(x, w1, preferred_element_type=jnp.float32)
    h1 = jnp.maximum(h1.astype(b1.dtype) + b1, 0).astype(jnp.bfloat16)
    h2 = jnp.dot(h1, w2, preferred_element_type=jnp.float32)
    h2 = jnp.maximum(h2.astype(b2.dtype) + b2, 0).astype(jnp.bfloat16)
    out = jnp.dot(h2, w3, preferred_element_type=jnp.float32)
    return out + b3


def _mlp_kernel(x_ref, w1_ref, b1_ref, w2_ref, b2_ref, w3_ref, b3_ref, o_ref):
    o_ref[...] = _mlp_math(
        x_ref[...], w1_ref[...], b1_ref[...], w2_ref[...], b2_ref[...],
        w3_ref[...], b3_ref[...]).astype(o_ref.dtype)


def _epilogue_dtype():
    """bf16 bias+ReLU epilogue on chips with a bf16 VPU (v6e/v7x); f32 otherwise."""
    try:
        kind = jax.devices()[0].device_kind.lower()
    except Exception:
        return jnp.float32
    if any(old in kind for old in ("v2", "v3", "v4", "v5")):
        return jnp.float32
    return jnp.bfloat16


def _round_up(x, m):
    return -(-x // m) * m


def _choose_tile(B, tile_b):
    if B > tile_b:
        return tile_b                                  # long grid; megacore shards it
    if B >= 512:
        return _round_up(_round_up(B, 2) // 2, 256)    # >=2 steps for v7x's 2 TCs
    return max(16, _round_up(B, 16))                   # single bf16-sublane-packed tile


def bp_forward(x, folded_params, *, tile_b=1024):
    """Full forward pass in one Pallas kernel, tiled over the batch axis."""
    w1, b1, w2, b2, w3, b3 = folded_params
    B, D_in = x.shape
    H = w1.shape[1]

    tile = _choose_tile(B, tile_b)
    B_pad = _round_up(B, tile)

    xb = x.astype(jnp.bfloat16)
    if B_pad != B:
        xb = jnp.pad(xb, ((0, B_pad - B), (0, 0)))

    grid = (B_pad // tile,)
    rows = lambda i: (i, 0)    # x / out: tile along the batch (sublane) axis
    full = lambda i: (0, 0)    # weights / biases: same (whole-array) block every step

    flops = 2 * B_pad * (D_in * H + H * H + H)
    param_bytes = sum(int(p.size) * p.dtype.itemsize
                      for p in (w1, b1, w2, b2, w3, b3))
    cost = pl.CostEstimate(
        flops=flops,
        transcendentals=0,
        bytes_accessed=int(xb.size) * 2 + param_bytes + B_pad * 4)

    # Per-step VMEM footprint estimate: h1/h2 live in f32 + bf16 (~12 B/elem), plus
    # the double-buffered x block and double-buffered bf16 weights, plus slack.
    need = 12 * tile * H + 4 * tile * D_in + 4 * (D_in + H + 1) * H + (2 << 20)
    vmem_limit = int(min(100 << 20, max(32 << 20, need)))

    out = pl.pallas_call(
        _mlp_kernel,
        out_shape=jax.ShapeDtypeStruct((B_pad, 1), jnp.float32),
        grid_spec=pltpu.PrefetchScalarGridSpec(
            num_scalar_prefetch=0,
            grid=grid,
            in_specs=[
                pl.BlockSpec((tile, D_in), rows),   # x            (bf16)
                pl.BlockSpec((D_in, H), full),      # w1 BN-folded (bf16)
                pl.BlockSpec((1, H), full),         # b1 BN-folded (epilogue dtype)
                pl.BlockSpec((H, H), full),         # w2 BN-folded (bf16)
                pl.BlockSpec((1, H), full),         # b2 BN-folded (epilogue dtype)
                pl.BlockSpec((H, 1), full),         # w3           (bf16)
                pl.BlockSpec((1, 1), full),         # b3           (f32)
            ],
            out_specs=pl.BlockSpec((tile, 1), rows),
        ),
        compiler_params=pltpu.CompilerParams(
            dimension_semantics=("parallel",),
            vmem_limit_bytes=vmem_limit),
        cost_estimate=cost,
    )(xb, w1, b1, w2, b2, w3, b3)

    return out[:B]   # padded garbage rows (bias->ReLU of zero rows) sliced away


def init_params(key, input_size):
    """Raw parameters mimicking nn.Linear / nn.BatchNorm1d (eval-mode stats)."""
    ks = jax.random.split(key, 14)

    def linear(kw, kb, fan_in, fan_out):
        bound = 1.0 / jnp.sqrt(fan_in)
        w = jax.random.uniform(kw, (fan_in, fan_out), jnp.float32, -bound, bound)
        b = jax.random.uniform(kb, (1, fan_out), jnp.float32, -bound, bound)
        return w, b

    w1, b1 = linear(ks[0], ks[1], input_size, HIDDEN)
    w2, b2 = linear(ks[2], ks[3], HIDDEN, HIDDEN)
    w3, b3 = linear(ks[4], ks[5], HIDDEN, 1)

    def bn(kg, kb, km, kv, n):
        gamma = jax.random.uniform(kg, (1, n), jnp.float32, 0.5, 1.5)
        beta = jax.random.normal(kb, (1, n), jnp.float32) * 0.1
        mean = jax.random.normal(km, (1, n), jnp.float32) * 0.1
        var = jax.random.uniform(kv, (1, n), jnp.float32, 0.5, 1.5)
        return gamma, beta, mean, var

    bn1 = bn(ks[6], ks[7], ks[8], ks[9], HIDDEN)
    bn2 = bn(ks[10], ks[11], ks[12], ks[13], HIDDEN)
    return (w1, b1, bn1, w2, b2, bn2, w3, b3)


def fold_params(raw, *, act_dtype=None):
    """Fold eval-mode BN into the linears; bf16 matmul operands, epilogue-dtype biases."""
    if act_dtype is None:
        act_dtype = _epilogue_dtype()
    w1, b1, (g1, be1, m1, v1), w2, b2, (g2, be2, m2, v2), w3, b3 = raw
    s1 = g1 * lax.rsqrt(v1 + EPS)
    t1 = be1 - m1 * s1
    s2 = g2 * lax.rsqrt(v2 + EPS)
    t2 = be2 - m2 * s2
    w1f = (w1 * s1).astype(jnp.bfloat16)
    b1f = (b1 * s1 + t1).astype(act_dtype)
    w2f = (w2 * s2).astype(jnp.bfloat16)
    b2f = (b2 * s2 + t2).astype(act_dtype)
    w3f = w3.astype(jnp.bfloat16)            # (HIDDEN, 1)
    return (w1f, b1f, w2f, b2f, w3f, b3)     # b3 stays (1, 1) f32


def reference_forward(x, folded_params):
    """Pure-JAX reference using exactly the same math as the kernel body."""
    return _mlp_math(x.astype(jnp.bfloat16), *folded_params)


if __name__ == "__main__":
    key = jax.random.PRNGKey(0)
    k_x, k_p = jax.random.split(key)

    B, D_in = 8, 32
    x = jax.random.normal(k_x, (B, D_in), jnp.float32)
    params = fold_params(init_params(k_p, D_in))

    out = bp_forward(x, params)
    out = jax.block_until_ready(out)

    ref = reference_forward(x, params)
    assert out.shape == (B, 1)
    assert jnp.allclose(out, ref, atol=2e-3, rtol=2e-3), "mismatch vs JAX reference"

    print("KERNEL_OK")
</pallas_src>

<mosaic_0001>
module attributes {stable_mosaic.version = 11 : i64} {
  func.func @_mlp_kernel(%arg0: i32, %arg1: memref<16x32xbf16, #tpu.memory_space<vmem>>, %arg2: memref<32x512xbf16, #tpu.memory_space<vmem>>, %arg3: memref<1x512xbf16, #tpu.memory_space<vmem>>, %arg4: memref<512x512xbf16, #tpu.memory_space<vmem>>, %arg5: memref<1x512xbf16, #tpu.memory_space<vmem>>, %arg6: memref<512x1xbf16, #tpu.memory_space<vmem>>, %arg7: memref<1x1xf32, #tpu.memory_space<vmem>>, %arg8: memref<16x1xf32, #tpu.memory_space<vmem>>) attributes {dimension_semantics = [#tpu.dimension_semantics<parallel>], iteration_bounds = array<i64: 1>, scalar_prefetch = 0 : i64, scratch_operands = 0 : i64, tpu.core_type = #tpu.core_type<tc>, window_params = [{transform_indices = @transform_0, window_bounds = array<i64: 16, 32>}, {pipeline_mode = #tpu.pipeline_mode<synchronous>, transform_indices = @transform_1, window_bounds = array<i64: 32, 512>}, {pipeline_mode = #tpu.pipeline_mode<synchronous>, transform_indices = @transform_2, window_bounds = array<i64: 1, 512>}, {pipeline_mode = #tpu.pipeline_mode<synchronous>, transform_indices = @transform_3, window_bounds = array<i64: 512, 512>}, {pipeline_mode = #tpu.pipeline_mode<synchronous>, transform_indices = @transform_4, window_bounds = array<i64: 1, 512>}, {pipeline_mode = #tpu.pipeline_mode<synchronous>, transform_indices = @transform_5, window_bounds = array<i64: 512, 1>}, {pipeline_mode = #tpu.pipeline_mode<synchronous>, transform_indices = @transform_6, window_bounds = array<i64: 1, 1>}, {transform_indices = @transform_7, window_bounds = array<i64: 16, 1>}]} {
    %c0 = arith.constant 0 : index
    %c0_0 = arith.constant 0 : index
    %0 = vector.load %arg1[%c0, %c0_0] : memref<16x32xbf16, #tpu.memory_space<vmem>>, vector<16x32xbf16>
    %c0_1 = arith.constant 0 : index
    %c0_2 = arith.constant 0 : index
    %1 = vector.load %arg2[%c0_1, %c0_2] : memref<32x512xbf16, #tpu.memory_space<vmem>>, vector<32x512xbf16>
    %c0_3 = arith.constant 0 : index
    %c0_4 = arith.constant 0 : index
    %2 = vector.load %arg3[%c0_3, %c0_4] : memref<1x512xbf16, #tpu.memory_space<vmem>>, vector<1x512xbf16>
    %c0_5 = arith.constant 0 : index
    %c0_6 = arith.constant 0 : index
    %3 = vector.load %arg4[%c0_5, %c0_6] : memref<512x512xbf16, #tpu.memory_space<vmem>>, vector<512x512xbf16>
    %c0_7 = arith.constant 0 : index
    %c0_8 = arith.constant 0 : index
    %4 = vector.load %arg5[%c0_7, %c0_8] : memref<1x512xbf16, #tpu.memory_space<vmem>>, vector<1x512xbf16>
    %c0_9 = arith.constant 0 : index
    %c0_10 = arith.constant 0 : index
    %5 = vector.load %arg6[%c0_9, %c0_10] : memref<512x1xbf16, #tpu.memory_space<vmem>>, vector<512x1xbf16>
    %c0_11 = arith.constant 0 : index
    %c0_12 = arith.constant 0 : index
    %6 = vector.load %arg7[%c0_11, %c0_12] : memref<1x1xf32, #tpu.memory_space<vmem>>, vector<1x1xf32>
    %cst = arith.constant dense<0.000000e+00> : vector<16x512xf32>
    %7 = tpu.matmul %0, %1, %cst {dimension_numbers = #tpu.dot_dimension_numbers<[1], [0], [0], [1], [0, 0, 1, 1], [], []>} : vector<16x32xbf16>, vector<32x512xbf16>, vector<16x512xf32> -> vector<16x512xf32>
    %8 = arith.truncf %7 : vector<16x512xf32> to vector<16x512xbf16>
    %9 = vector.broadcast %2 : vector<1x512xbf16> to vector<16x512xbf16>
    %10 = arith.addf %8, %9 : vector<16x512xbf16>
    %cst_13 = arith.constant 0.000000e+00 : bf16
    %11 = vector.broadcast %cst_13 : bf16 to vector<16x512xbf16>
    %12 = arith.maximumf %10, %11 : vector<16x512xbf16>
    %cst_14 = arith.constant dense<0.000000e+00> : vector<16x512xf32>
    %13 = tpu.matmul %12, %3, %cst_14 {dimension_numbers = #tpu.dot_dimension_numbers<[1], [0], [0], [1], [0, 0, 1, 1], [], []>} : vector<16x512xbf16>, vector<512x512xbf16>, vector<16x512xf32> -> vector<16x512xf32>
    %14 = arith.truncf %13 : vector<16x512xf32> to vector<16x512xbf16>
    %15 = vector.broadcast %4 : vector<1x512xbf16> to vector<16x512xbf16>
    %16 = arith.addf %14, %15 : vector<16x512xbf16>
    %cst_15 = arith.constant 0.000000e+00 : bf16
    %17 = vector.broadcast %cst_15 : bf16 to vector<16x512xbf16>
    %18 = arith.maximumf %16, %17 : vector<16x512xbf16>
    %cst_16 = arith.constant dense<0.000000e+00> : vector<16x1xf32>
    %19 = tpu.matmul %18, %5, %cst_16 {dimension_numbers = #tpu.dot_dimension_numbers<[1], [0], [0], [1], [0, 0, 1, 1], [], []>} : vector<16x512xbf16>, vector<512x1xbf16>, vector<16x1xf32> -> vector<16x1xf32>
    %20 = vector.broadcast %6 : vector<1x1xf32> to vector<16x1xf32>
    %21 = arith.addf %19, %20 : vector<16x1xf32>
    %c0_17 = arith.constant 0 : index
    %c0_18 = arith.constant 0 : index
    %22 = vector.load %arg8[%c0_17, %c0_18] : memref<16x1xf32, #tpu.memory_space<vmem>>, vector<16x1xf32>
    tpu.vector_store %arg8[%c0_17, %c0_18], %21 {strides = array<i32>} : memref<16x1xf32, #tpu.memory_space<vmem>>, vector<16x1xf32>,
    return
  }
  func.func @transform_0(%arg0: i32) -> (i32, i32) {
    %c0_i32 = arith.constant 0 : i32
    %c0_i32_0 = arith.constant 0 : i32
    return %arg0, %c0_i32 : i32, i32
  }
  func.func @transform_1(%arg0: i32) -> (i32, i32) {
    %c0_i32 = arith.constant 0 : i32
    %c0_i32_0 = arith.constant 0 : i32
    %c0_i32_1 = arith.constant 0 : i32
    return %c0_i32, %c0_i32_0 : i32, i32
  }
  func.func @transform_2(%arg0: i32) -> (i32, i32) {
    %c0_i32 = arith.constant 0 : i32
    %c0_i32_0 = arith.constant 0 : i32
    %c0_i32_1 = arith.constant 0 : i32
    return %c0_i32, %c0_i32_0 : i32, i32
  }
  func.func @transform_3(%arg0: i32) -> (i32, i32) {
    %c0_i32 = arith.constant 0 : i32
    %c0_i32_0 = arith.constant 0 : i32
    %c0_i32_1 = arith.constant 0 : i32
    return %c0_i32, %c0_i32_0 : i32, i32
  }
  func.func @transform_4(%arg0: i32) -> (i32, i32) {
    %c0_i32 = arith.constant 0 : i32
    %c0_i32_0 = arith.constant 0 : i32
    %c0_i32_1 = arith.constant 0 : i32
    return %c0_i32, %c0_i32_0 : i32, i32
  }
  func.func @transform_5(%arg0: i32) -> (i32, i32) {
    %c0_i32 = arith.constant 0 : i32
    %c0_i32_0 = arith.constant 0 : i32
    %c0_i32_1 = arith.constant 0 : i32
    return %c0_i32, %c0_i32_0 : i32, i32
  }
  func.func @transform_6(%arg0: i32) -> (i32, i32) {
    %c0_i32 = arith.constant 0 : i32
    %c0_i32_0 = arith.constant 0 : i32
    %c0_i32_1 = arith.constant 0 : i32
    return %c0_i32, %c0_i32_0 : i32, i32
  }
  func.func @transform_7(%arg0: i32) -> (i32, i32) {
    %c0_i32 = arith.constant 0 : i32
    %c0_i32_0 = arith.constant 0 : i32
    return %arg0, %c0_i32 : i32, i32
  }
}

</mosaic_0001>

<bundles_post_ra>
// kernel: tpu_custom_call.1
= control target key start
LH: loop header
LB: loop body
LE: loop exit
PB: predicated region body
PF: predicated region fallthrough
CT: control target
= control target key end

     0   :  { %s2343_s0 = inlined_call_operand.vmem [shape: bf16[16,32], index: 0, kind: input, shape index: {}]   ;;  %s2344_s1 = inlined_call_operand.vmem [shape: bf16[32,512], index: 1, kind: input, shape index: {}]   ;;  %s2345_s2 = inlined_call_operand.vmem [shape: bf16[1,512], index: 2, kind: input, shape index: {}]   ;;  %s2346_s3 = inlined_call_operand.hbm [shape: bf16[512,512], index: 3, kind: input, shape index: {}]   ;;  %s2347_s4 = inlined_call_operand.vmem [shape: bf16[1,512], index: 4, kind: input, shape index: {}]   ;;  %s2348_s5 = inlined_call_operand.vmem [shape: bf16[512,1], index: 5, kind: input, shape index: {}]   ;;  %s2349_s6 = inlined_call_operand.<no memory space> [shape: f32[1,1], index: 6, kind: input, shape index: {}]   ;;  %s2350_s7 = inlined_call_operand.vmem [shape: f32[16,1], index: 7, kind: output, shape index: {}]  }
   0x1   :  { %v12_v0 = vstv %s2349_s6 }
   0x2   :  { %13 = vst [vmem:[#allocation2] sm:$0x1] %v12_v0 }
   0x3   :  { %14 = vsyncpa [#allocation4], 0  ;;  %s2105_s26 = smov [#allocation3]   ;;  %s2081_s30 = scalar_lea.hbm %s2346_s3, 16384 }
   0x4   :  { %s26_s27 = sshll.u32 %s2105_s26, 4  ;;  %p2082_p0 = scmp.ne.s32.totalorder %s2346_s3, %s2081_s30  ;;  %s27_s27 = int_to_ptr.vmem [resolvable:$true] %s26_s27 }
   0x5   :  { %p2085_p1 = scmp.lt.u32.totalorder %s2081_s30, %s2346_s3 }
   0x7   :  { %p2087_p2 = pnand %p2085_p1, %p2082_p0 }
   0x9   :  { %2090 = shalt.err (!%p2087_p2)
}
   0xa   :  { %s2091_s6 = scalar_lea.vmem %s27_s27, 16384  ;;  %p2096_p4 = scmp.lt.s32.totalorder %s27_s27, %s27_s27 }
   0xb   :  { %p2092_p3 = scmp.ne.s32.totalorder %s27_s27, %s2091_s6  ;;  %p2097_p5 = scmp.lt.s32.totalorder %s2091_s6, %s2091_s6 }
   0xd   :  { %p2098_p6 = por %p2097_p5, %p2096_p4 }
   0xf   :  { %p2099_p7 = pnand %p2098_p6, %p2092_p3 }
  0x11   :  { %2102 = shalt.err (!%p2099_p7)
}
  0x12   :  { %s2106_s12 = smov 256   ;;  %s2107_s13 = smov 16  }
  0x13   :  { %32 = dma.hbm_to_vmem [thread:$0]  %s2346_s3, 16384, %s27_s27, [#allocation4], %s2106_s12, %s2106_s12, %s2107_s13  }
  0x14   :  { %2103 = dma.done.wait [#allocation4], 16384  }
  0x15   :  { %2104 = vsyncadd [#allocation4], 4294950912  ;;  %v2108_v1 = vmov 0   ;;  %v1844_v2 = vld [vmem:[%s2344_s1 + $0x4] ss:$16 sps:$4 sm:$0xff]   ;;  %vm293_vm0 = vcmask 261120  }
  0x16   :  { %329 = vmatprep.mubr.bf16.mxu0 %v2108_v1  ;;  %372 = vmatprep.mubr.bf16.mxu1 %v2108_v1  ;;  %v1846_v3 = vld [vmem:[%s2344_s1] ss:$16 sps:$4 sm:$0xff]   ;;  %v1847_v4 = vld [vmem:[%s2344_s1 + $0x24] ss:$16 sps:$4 sm:$0xff]   ;;  %v1851_v7 = vld [vmem:[%s2344_s1 + $0xc] ss:$16 sps:$4 sm:$0xff]  }
  0x17   :  { %297 = vmatprep.subr.bf16.mxu0 %v1844_v2  ;;  %v1849_v5 = vld [vmem:[%s2344_s1 + $0x20] ss:$16 sps:$4 sm:$0xff]   ;;  %v1853_v8 = vld [vmem:[%s2344_s1 + $0x8] ss:$16 sps:$4 sm:$0xff]   ;;  %v1854_v9 = vld [vmem:[%s2344_s1 + $0x2c] ss:$16 sps:$4 sm:$0xff]   ;;  %340 = vmatprep.subr.bf16.mxu1 %v1851_v7 }
  0x18   :  { %298 = vmatpush1.bf16.msra.mxu0 %v1846_v3  ;;  %v1850_v6 = vld [vmem:[%s2343_s0] sm:$0xff]   ;;  %v1856_v10 = vld [vmem:[%s2344_s1 + $0x28] ss:$16 sps:$4 sm:$0xff]   ;;  %341 = vmatpush1.bf16.msra.mxu1 %v1853_v8  ;;  %vm1605_vm1 = vcmask 7168  }
  0x19   :  { %299 = vmatprep.subr.bf16.mxu0 %v1847_v4  ;;  %v1857_v11 = vld [vmem:[#allocation3] ss:$16 sps:$4 sm:$0xff]   ;;  %v1859_v12 = vld [vmem:[#allocation3 + $0x4] ss:$16 sps:$4 sm:$0xff]   ;;  %342 = vmatprep.subr.bf16.mxu1 %v1854_v9  ;;  %v1862_v13 = vld [vmem:[#allocation3 + $0xc] ss:$16 sps:$4 sm:$0xff]  }
  0x1a   :  { %v1865_v14 = vld [vmem:[#allocation3 + $0x24] ss:$16 sps:$4 sm:$0xff]   ;;  %v1860_v15 = vld [vmem:[#allocation3 + $0x8] ss:$16 sps:$4 sm:$0xff]   ;;  %v1863_v16 = vld [vmem:[#allocation3 + $0x20] ss:$16 sps:$4 sm:$0xff]  }
  0x1b   :  { %v1868_v17 = vld [vmem:[#allocation3 + $0x2c] ss:$16 sps:$4 sm:$0xff]   ;;  %v1871_v18 = vld [vmem:[#allocation3 + $0x44] ss:$16 sps:$4 sm:$0xff]   ;;  %v1866_v19 = vld [vmem:[#allocation3 + $0x28] ss:$16 sps:$4 sm:$0xff]  }
  0x1c   :  { %300 = vmatpush1.bf16.msra.mxu0 %v1849_v5  ;;  %343 = vmatpush1.bf16.msra.mxu1 %v1856_v10  ;;  %v1869_v20 = vld [vmem:[#allocation3 + $0x40] ss:$16 sps:$4 sm:$0xff]   ;;  %v1874_v21 = vld [vmem:[#allocation3 + $0x4c] ss:$16 sps:$4 sm:$0xff]   ;;  %v1877_v22 = vld [vmem:[#allocation3 + $0x64] ss:$16 sps:$4 sm:$0xff]  }
  0x1d   :  { %1088 = vmatprep.subr.bf16.mxu0 %v1859_v12  ;;  %1174 = vmatprep.subr.bf16.mxu1 %v1862_v13  ;;  %v1872_v23 = vld [vmem:[#allocation3 + $0x48] ss:$16 sps:$4 sm:$0xff]   ;;  %v1875_v24 = vld [vmem:[#allocation3 + $0x60] ss:$16 sps:$4 sm:$0xff]   ;;  %v1880_v25 = vld [vmem:[#allocation3 + $0x6c] ss:$16 sps:$4 sm:$0xff]  }
  0x1e   :  { %v1883_v26 = vld [vmem:[#allocation3 + $0x84] ss:$16 sps:$4 sm:$0xff]   ;;  %v1878_v27 = vld [vmem:[#allocation3 + $0x68] ss:$16 sps:$4 sm:$0xff]   ;;  %v1881_v28 = vld [vmem:[#allocation3 + $0x80] ss:$16 sps:$4 sm:$0xff]  }
  0x1f   :  { %1622 = vmatmul.mubr.msk.bf16.vlgmr.msra.gmra.mrb[0].mxu0 %vm293_vm0, %v1850_v6  ;;  %1623 = vmatmul.mubr.msk.bf16.vlgmr.msra.gmra.mrb[0].mxu1 %vm293_vm0, %v1850_v6  ;;  %v1886_v29 = vld [vmem:[#allocation3 + $0x8c] ss:$16 sps:$4 sm:$0xff]   ;;  %v1889_v30 = vld [vmem:[#allocation3 + $0xa4] ss:$16 sps:$4 sm:$0xff]   ;;  %v1884_v31 = vld [vmem:[#allocation3 + $0x88] ss:$16 sps:$4 sm:$0xff]  }
  0x20   :  { %1089 = vmatpush1.bf16.msra.mxu0 %v1857_v11  ;;  %1175 = vmatpush1.bf16.msra.mxu1 %v1860_v15  ;;  %v1887_v32 = vld [vmem:[#allocation3 + $0xa0] ss:$16 sps:$4 sm:$0xff]   ;;  %v1892_v33 = vld [vmem:[#allocation3 + $0xac] ss:$16 sps:$4 sm:$0xff]   ;;  %v1895_v34 = vld [vmem:[#allocation3 + $0xc4] ss:$16 sps:$4 sm:$0xff]  }
  0x21   :  { %1090 = vmatprep.subr.bf16.mxu0 %v1865_v14  ;;  %1176 = vmatprep.subr.bf16.mxu1 %v1868_v17  ;;  %v1890_v35 = vld [vmem:[#allocation3 + $0xa8] ss:$16 sps:$4 sm:$0xff]   ;;  %v1893_v36 = vld [vmem:[#allocation3 + $0xc0] ss:$16 sps:$4 sm:$0xff]   ;;  %v1898_v37 = vld [vmem:[#allocation3 + $0xcc] ss:$16 sps:$4 sm:$0xff]  }
  0x22   :  { %v1901_v38 = vld [vmem:[#allocation3 + $0xe4] ss:$16 sps:$4 sm:$0xff]   ;;  %v1896_v39 = vld [vmem:[#allocation3 + $0xc8] ss:$16 sps:$4 sm:$0xff]   ;;  %v1899_v40 = vld [vmem:[#allocation3 + $0xe0] ss:$16 sps:$4 sm:$0xff]  }
  0x23   :  { %v1904_v41 = vld [vmem:[#allocation3 + $0xec] ss:$16 sps:$4 sm:$0xff]   ;;  %v1907_v42 = vld [vmem:[#allocation3 + $0x104] ss:$16 sps:$4 sm:$0xff]   ;;  %v1902_v43 = vld [vmem:[#allocation3 + $0xe8] ss:$16 sps:$4 sm:$0xff]  }
  0x24   :  { %1091 = vmatpush1.bf16.msra.mxu0 %v1863_v16  ;;  %1177 = vmatpush1.bf16.msra.mxu1 %v1866_v19  ;;  %v1905_v44 = vld [vmem:[#allocation3 + $0x100] ss:$16 sps:$4 sm:$0xff]   ;;  %v1910_v45 = vld [vmem:[#allocation3 + $0x10c] ss:$16 sps:$4 sm:$0xff]   ;;  %v1913_v46 = vld [vmem:[#allocation3 + $0x124] ss:$16 sps:$4 sm:$0xff]   ;;  %v399_v16 = vlaneseq }
  0x25   :  { %1092 = vmatprep.subr.bf16.mxu0 %v1871_v18  ;;  %1178 = vmatprep.subr.bf16.mxu1 %v1874_v21  ;;  %v1908_v47 = vld [vmem:[#allocation3 + $0x108] ss:$16 sps:$4 sm:$0xff]   ;;  %v1911_v48 = vld [vmem:[#allocation3 + $0x120] ss:$16 sps:$4 sm:$0xff]   ;;  %v1916_v49 = vld [vmem:[#allocation3 + $0x12c] ss:$16 sps:$4 sm:$0xff]  }
  0x26   :  { %v1919_v50 = vld [vmem:[#allocation3 + $0x144] ss:$16 sps:$4 sm:$0xff]   ;;  %v1914_v51 = vld [vmem:[#allocation3 + $0x128] ss:$16 sps:$4 sm:$0xff]   ;;  %v1917_v52 = vld [vmem:[#allocation3 + $0x140] ss:$16 sps:$4 sm:$0xff]  }
  0x27   :  { %v1922_v53 = vld [vmem:[#allocation3 + $0x14c] ss:$16 sps:$4 sm:$0xff]   ;;  %v1925_v54 = vld [vmem:[#allocation3 + $0x164] ss:$16 sps:$4 sm:$0xff]   ;;  %v1920_v55 = vld [vmem:[#allocation3 + $0x148] ss:$16 sps:$4 sm:$0xff]  }
  0x28   :  { %1093 = vmatpush1.bf16.msra.mxu0 %v1869_v20  ;;  %1179 = vmatpush1.bf16.msra.mxu1 %v1872_v23  ;;  %v1923_v56 = vld [vmem:[#allocation3 + $0x160] ss:$16 sps:$4 sm:$0xff]   ;;  %v1928_v57 = vld [vmem:[#allocation3 + $0x16c] ss:$16 sps:$4 sm:$0xff]   ;;  %v1931_v58 = vld [vmem:[#allocation3 + $0x184] ss:$16 sps:$4 sm:$0xff]  }
  0x29   :  { %1094 = vmatprep.subr.bf16.mxu0 %v1877_v22  ;;  %1180 = vmatprep.subr.bf16.mxu1 %v1880_v25  ;;  %v1926_v59 = vld [vmem:[#allocation3 + $0x168] ss:$16 sps:$4 sm:$0xff]   ;;  %v1929_v60 = vld [vmem:[#allocation3 + $0x180] ss:$16 sps:$4 sm:$0xff]   ;;  %v1934_v61 = vld [vmem:[#allocation3 + $0x18c] ss:$16 sps:$4 sm:$0xff]  }
  0x2a   :  { %v1937_v62 = vld [vmem:[#allocation3 + $0x1a4] ss:$16 sps:$4 sm:$0xff]   ;;  %v1932_v63 = vld [vmem:[#allocation3 + $0x188] ss:$16 sps:$4 sm:$0xff]   ;;  %v1935_v0 = vld [vmem:[#allocation3 + $0x1a0] ss:$16 sps:$4 sm:$0xff]  }
  0x2b   :  { %v1940_v2 = vld [vmem:[#allocation3 + $0x1ac] ss:$16 sps:$4 sm:$0xff]   ;;  %v1938_v3 = vld [vmem:[#allocation3 + $0x1a8] ss:$16 sps:$4 sm:$0xff]   ;;  %v1943_v4 = vld [vmem:[#allocation3 + $0x1c4] ss:$16 sps:$4 sm:$0xff]  }
  0x2c   :  { %1095 = vmatpush1.bf16.msra.mxu0 %v1875_v24  ;;  %1181 = vmatpush1.bf16.msra.mxu1 %v1878_v27  ;;  %v1946_v5 = vld [vmem:[#allocation3 + $0x1cc] ss:$16 sps:$4 sm:$0xff]   ;;  %v1941_v6 = vld [vmem:[#allocation3 + $0x1c0] ss:$16 sps:$4 sm:$0xff]   ;;  %v1944_v7 = vld [vmem:[#allocation3 + $0x1c8] ss:$16 sps:$4 sm:$0xff]  }
  0x2d   :  { %1096 = vmatprep.subr.bf16.mxu0 %v1883_v26  ;;  %1182 = vmatprep.subr.bf16.mxu1 %v1886_v29  ;;  %v1949_v8 = vld [vmem:[#allocation3 + $0x1e4] ss:$16 sps:$4 sm:$0xff]   ;;  %v1952_v9 = vld [vmem:[#allocation3 + $0x1ec] ss:$16 sps:$4 sm:$0xff]   ;;  %v1947_v10 = vld [vmem:[#allocation3 + $0x1e0] ss:$16 sps:$4 sm:$0xff]  }
  0x2e   :  { %v1950_v11 = vld [vmem:[#allocation3 + $0x1e8] ss:$16 sps:$4 sm:$0xff]   ;;  %v1955_v12 = vld [vmem:[#allocation3 + $0x204] ss:$16 sps:$4 sm:$0xff]   ;;  %v1958_v13 = vld [vmem:[#allocation3 + $0x20c] ss:$16 sps:$4 sm:$0xff]  }
  0x2f   :  { %v2109_v14 = vmov 1966171168   ;;  %v400_v18 = vshrl.u32 %v399_v16, 7  ;;  %v1998_v16 = vld [vmem:[#allocation3 + $0x2e8] ss:$16 sps:$4 sm:$0xff]  }
  0x30   :  { %1097 = vmatpush1.bf16.msra.mxu0 %v1881_v28  ;;  %1183 = vmatpush1.bf16.msra.mxu1 %v1884_v31  ;;  %v397_v15 = vunpack.c.l.s4 %v2109_v14  ;;  %v1624_v19 = vld.sshfl [vmem:[%s2345_s2] sm:$0x33 pattern:$0x75316420] }
  0x31   :  { %1098 = vmatprep.subr.bf16.mxu0 %v1889_v30  ;;  %1184 = vmatprep.subr.bf16.mxu1 %v1892_v33  ;;  %v395_v21 = vcombine.high %v1624_v19, %v1624_v19  ;;  %v2207_v25 = vsub.s32 0, %v400_v18  ;;  %v2000_v14 = vld [vmem:[#allocation3 + $0x2ec] ss:$16 sps:$4 sm:$0xff]  }
  0x32   :  { %v398_v17 = vunpack.c.0.s8 %v397_v15  ;;  %v1995_v15 = vld [vmem:[#allocation3 + $0x2e0] ss:$16 sps:$4 sm:$0xff]  }
  0x34   :  { %1099 = vmatpush1.bf16.msra.mxu0 %v1887_v32  ;;  %1185 = vmatpush1.bf16.msra.mxu1 %v1890_v35  ;;  %v2199_v20 = vsub.s32 %v398_v17, %v400_v18  ;;  %v2003_v17 = vld [vmem:[#allocation3 + $0x304] ss:$16 sps:$4 sm:$0xff]   ;;  %v2006_v18 = vld [vmem:[#allocation3 + $0x30c] ss:$16 sps:$4 sm:$0xff]  }
  0x35   :  { %1100 = vmatprep.subr.bf16.mxu0 %v1895_v34  ;;  %1186 = vmatprep.subr.bf16.mxu1 %v1898_v37 }
  0x36   :  { %v2202_v22 = vrot.slane %v1624_v19, %v2199_v20  ;;  %v409_v23 = vrot.slane %v395_v21, %v2199_v20  ;;  %v2001_v19 = vld [vmem:[#allocation3 + $0x300] ss:$16 sps:$4 sm:$0xff]   ;;  %v2004_v21 = vld [vmem:[#allocation3 + $0x308] ss:$16 sps:$4 sm:$0xff]  }
  0x38   :  { %1101 = vmatpush1.bf16.msra.mxu0 %v1893_v36  ;;  %1187 = vmatpush1.bf16.msra.mxu1 %v1896_v39  ;;  %v413_v24 = vpack.i.b16 %v2202_v22, %v2202_v22  ;;  %v420_v26 = vpack.i.b16 %v409_v23, %v409_v23  ;;  %v411_v27 = vcombine.high %v409_v23, %v409_v23  ;;  %v2009_v23 = vld [vmem:[#allocation3 + $0x324] ss:$16 sps:$4 sm:$0xff]  }
  0x39   :  { %1102 = vmatprep.subr.bf16.mxu0 %v1901_v38  ;;  %1188 = vmatprep.subr.bf16.mxu1 %v1904_v41 }
  0x3a   :  { %v418_v30 = vrot.slane %v413_v24, %v2207_v25  ;;  %v425_v32 = vrot.slane %v420_v26, %v2207_v25  ;;  %v434_v33 = vpack.i.b16 %v411_v27, %v411_v27  ;;  %v2012_v24 = vld [vmem:[#allocation3 + $0x32c] ss:$16 sps:$4 sm:$0xff]   ;;  %v2007_v26 = vld [vmem:[#allocation3 + $0x320] ss:$16 sps:$4 sm:$0xff]   ;;  %v2010_v27 = vld [vmem:[#allocation3 + $0x328] ss:$16 sps:$4 sm:$0xff]  }
  0x3c   :  { %1103 = vmatpush1.bf16.msra.mxu0 %v1899_v40  ;;  %1189 = vmatpush1.bf16.msra.mxu1 %v1902_v43 }
  0x3d   :  { %1104 = vmatprep.subr.bf16.mxu0 %v1907_v42  ;;  %1190 = vmatprep.subr.bf16.mxu1 %v1910_v45  ;;  %v439_v42 = vrot.slane %v434_v33, %v2207_v25  ;;  %v2024_v33 = vld [vmem:[#allocation3 + $0x36c] ss:$16 sps:$4 sm:$0xff]  }
  0x40   :  { %1105 = vmatpush1.bf16.msra.mxu0 %v1905_v44  ;;  %1191 = vmatpush1.bf16.msra.mxu1 %v1908_v47  ;;  %v1956_v47 = vld [vmem:[#allocation3 + $0x208] ss:$16 sps:$4 sm:$0xff]  }
  0x41   :  { %1106 = vmatprep.subr.bf16.mxu0 %v1913_v46  ;;  %1192 = vmatprep.subr.bf16.mxu1 %v1916_v49  ;;  %v1953_v46 = vld [vmem:[#allocation3 + $0x200] ss:$16 sps:$4 sm:$0xff]  }
  0x44   :  { %1107 = vmatpush1.bf16.msra.mxu0 %v1911_v48  ;;  %1193 = vmatpush1.bf16.msra.mxu1 %v1914_v51  ;;  %v1964_v51 = vld [vmem:[#allocation3 + $0x22c] ss:$16 sps:$4 sm:$0xff]  }
  0x45   :  { %1108 = vmatprep.subr.bf16.mxu0 %v1919_v50  ;;  %1194 = vmatprep.subr.bf16.mxu1 %v1922_v53  ;;  %v1961_v50 = vld [vmem:[#allocation3 + $0x224] ss:$16 sps:$4 sm:$0xff]   ;;  %v1959_v53 = vld [vmem:[#allocation3 + $0x220] ss:$16 sps:$4 sm:$0xff]  }
  0x48   :  { %1109 = vmatpush1.bf16.msra.mxu0 %v1917_v52  ;;  %1195 = vmatpush1.bf16.msra.mxu1 %v1920_v55 }
  0x49   :  { %1110 = vmatprep.subr.bf16.mxu0 %v1925_v54  ;;  %1196 = vmatprep.subr.bf16.mxu1 %v1928_v57  ;;  %v1962_v54 = vld [vmem:[#allocation3 + $0x228] ss:$16 sps:$4 sm:$0xff]   ;;  %v1970_v57 = vld [vmem:[#allocation3 + $0x24c] ss:$16 sps:$4 sm:$0xff]  }
  0x4c   :  { %1111 = vmatpush1.bf16.msra.mxu0 %v1923_v56  ;;  %1197 = vmatpush1.bf16.msra.mxu1 %v1926_v59  ;;  %v1967_v56 = vld [vmem:[#allocation3 + $0x244] ss:$16 sps:$4 sm:$0xff]   ;;  %v1968_v59 = vld [vmem:[#allocation3 + $0x248] ss:$16 sps:$4 sm:$0xff]  }
  0x4d   :  { %1112 = vmatprep.subr.bf16.mxu0 %v1931_v58  ;;  %1198 = vmatprep.subr.bf16.mxu1 %v1934_v61  ;;  %v1965_v58 = vld [vmem:[#allocation3 + $0x240] ss:$16 sps:$4 sm:$0xff]   ;;  %v1976_v61 = vld [vmem:[#allocation3 + $0x26c] ss:$16 sps:$4 sm:$0xff]  }
  0x50   :  { %1113 = vmatpush1.bf16.msra.mxu0 %v1929_v60  ;;  %1199 = vmatpush1.bf16.msra.mxu1 %v1932_v63  ;;  %v1973_v60 = vld [vmem:[#allocation3 + $0x264] ss:$16 sps:$4 sm:$0xff]   ;;  %v1974_v63 = vld [vmem:[#allocation3 + $0x268] ss:$16 sps:$4 sm:$0xff]  }
  0x51   :  { %1114 = vmatprep.subr.bf16.mxu0 %v1937_v62  ;;  %1200 = vmatprep.subr.bf16.mxu1 %v1940_v2  ;;  %v1971_v62 = vld [vmem:[#allocation3 + $0x260] ss:$16 sps:$4 sm:$0xff]   ;;  %v1982_v2 = vld [vmem:[#allocation3 + $0x28c] ss:$16 sps:$4 sm:$0xff]  }
  0x54   :  { %1115 = vmatpush1.bf16.msra.mxu0 %v1935_v0  ;;  %1201 = vmatpush1.bf16.msra.mxu1 %v1938_v3  ;;  %v1979_v0 = vld [vmem:[#allocation3 + $0x284] ss:$16 sps:$4 sm:$0xff]   ;;  %v1977_v3 = vld [vmem:[#allocation3 + $0x280] ss:$16 sps:$4 sm:$0xff]  }
  0x55   :  { %1116 = vmatprep.subr.bf16.mxu0 %v1943_v4  ;;  %1202 = vmatprep.subr.bf16.mxu1 %v1946_v5  ;;  %v1980_v4 = vld [vmem:[#allocation3 + $0x288] ss:$16 sps:$4 sm:$0xff]   ;;  %v1985_v5 = vld [vmem:[#allocation3 + $0x2a4] ss:$16 sps:$4 sm:$0xff]  }
  0x58   :  { %1117 = vmatpush1.bf16.msra.mxu0 %v1941_v6  ;;  %1203 = vmatpush1.bf16.msra.mxu1 %v1944_v7  ;;  %v1988_v6 = vld [vmem:[#allocation3 + $0x2ac] ss:$16 sps:$4 sm:$0xff]   ;;  %v1983_v7 = vld [vmem:[#allocation3 + $0x2a0] ss:$16 sps:$4 sm:$0xff]  }
  0x59   :  { %1118 = vmatprep.subr.bf16.mxu0 %v1949_v8  ;;  %1204 = vmatprep.subr.bf16.mxu1 %v1952_v9  ;;  %v1986_v8 = vld [vmem:[#allocation3 + $0x2a8] ss:$16 sps:$4 sm:$0xff]   ;;  %v1991_v9 = vld [vmem:[#allocation3 + $0x2c4] ss:$16 sps:$4 sm:$0xff]  }
  0x5c   :  { %1119 = vmatpush1.bf16.msra.mxu0 %v1947_v10  ;;  %1205 = vmatpush1.bf16.msra.mxu1 %v1950_v11  ;;  %v1994_v10 = vld [vmem:[#allocation3 + $0x2cc] ss:$16 sps:$4 sm:$0xff]   ;;  %v1989_v11 = vld [vmem:[#allocation3 + $0x2c0] ss:$16 sps:$4 sm:$0xff]  }
  0x5d   :  { %1131 = vmatprep.subr.bf16.mxu0 %v1955_v12  ;;  %1217 = vmatprep.subr.bf16.mxu1 %v1958_v13  ;;  %v1992_v12 = vld [vmem:[#allocation3 + $0x2c8] ss:$16 sps:$4 sm:$0xff]   ;;  %v1997_v13 = vld [vmem:[#allocation3 + $0x2e4] ss:$16 sps:$4 sm:$0xff]  }
  0xf2   :  { %v331_v28 = vpop.f32.mrb[0].mxu0  ;;  %v2211_v37 = vpop.f32.mrb[0].mxu1 }
  0xf3   :  { %v333_v29 = vpop.f32.mrb[1].mxu0  ;;  %v376_v39 = vpop.f32.mrb[1].mxu1 }
  0xf4   :  { %v335_v31 = vpop.f32.mrb[2].mxu0  ;;  %v2213_v41 = vpop.f32.mrb[2].mxu1 }
  0xf5   :  { %v383_v34 = vpack.c.bf16 %v335_v31, %v331_v28  ;;  %v337_v35 = vpop.f32.mrb[3].mxu0  ;;  %v385_v43 = vpack.c.bf16 %v2213_v41, %v2211_v37  ;;  %v380_v44 = vpop.f32.mrb[3].mxu1  ;;  %v2015_v28 = vld [vmem:[#allocation3 + $0x344] ss:$16 sps:$4 sm:$0xff]   ;;  %v2016_v31 = vld [vmem:[#allocation3 + $0x348] ss:$16 sps:$4 sm:$0xff]  }
  0xf6   :  { %v384_v36 = vpack.c.bf16 %v337_v35, %v333_v29  ;;  %v386_v48 = vpack.c.bf16 %v380_v44, %v376_v39  ;;  %v2018_v29 = vld [vmem:[#allocation3 + $0x34c] ss:$16 sps:$4 sm:$0xff]   ;;  %v2022_v35 = vld [vmem:[#allocation3 + $0x368] ss:$16 sps:$4 sm:$0xff]   ;;  %v2025_v39 = vld [vmem:[#allocation3 + $0x380] ss:$16 sps:$4 sm:$0xff]  }
  0xf7   :  { %v440_v38 = vadd.bf16 %v418_v30, %v383_v34  ;;  %v2013_v30 = vld [vmem:[#allocation3 + $0x340] ss:$16 sps:$4 sm:$0xff]   ;;  %v2033_v44 = vld [vmem:[#allocation3 + $0x3a4] ss:$16 sps:$4 sm:$0xff]  }
  0xf8   :  { %v441_v40 = vadd.bf16 %v425_v32, %v384_v36  ;;  %v443_v52 = vadd.bf16 %v439_v42, %v386_v48  ;;  %v2021_v32 = vld [vmem:[#allocation3 + $0x364] ss:$16 sps:$4 sm:$0xff]   ;;  %v2019_v34 = vld [vmem:[#allocation3 + $0x360] ss:$16 sps:$4 sm:$0xff]   ;;  %v410_v42 = vcombine.high %v2202_v22, %v2202_v22 }
  0xf9   :  { %v444_v49 = vmax.bf16 %v2108_v1, %v440_v38  ;;  %v2027_v36 = vld [vmem:[#allocation3 + $0x384] ss:$16 sps:$4 sm:$0xff]   ;;  %v2030_v38 = vld [vmem:[#allocation3 + $0x38c] ss:$16 sps:$4 sm:$0xff]  }
  0xfa   :  { %v445_v45 = vmax.bf16 %v2108_v1, %v441_v40  ;;  %v447_v55 = vmax.bf16 %v2108_v1, %v443_v52  ;;  %v2028_v40 = vld [vmem:[#allocation3 + $0x388] ss:$16 sps:$4 sm:$0xff]   ;;  %v427_v48 = vpack.i.b16 %v410_v42, %v410_v42  ;;  %v2045_v22 = vld [vmem:[#allocation3 + $0x3e4] ss:$16 sps:$4 sm:$0xff]  }
  0xfb   :  { %v2040_v52 = vld [vmem:[#allocation3 + $0x3c8] ss:$16 sps:$4 sm:$0xff]   ;;  %v2052_v37 = vld [vmem:[%s2348_s5 + $0x80] sm:$0xff]  }
  0xfc   :  { %1120 = vmatprep.mubr.bf16.mxu0 %v445_v45  ;;  %1206 = vmatprep.mubr.bf16.mxu1 %v445_v45  ;;  %v2036_v45 = vld [vmem:[#allocation3 + $0x3ac] ss:$16 sps:$4 sm:$0xff]  }
  0xfd   :  { %1121 = vmatmul.mubr.bf16.vlgmr.msra.gmra.mrb[4].mxu0 %v444_v49  ;;  %1207 = vmatmul.mubr.bf16.vlgmr.msra.gmra.mrb[4].mxu1 %v444_v49  ;;  %v2039_v49 = vld [vmem:[#allocation3 + $0x3c4] ss:$16 sps:$4 sm:$0xff]  }
  0xfe   :  { %1132 = vmatpush1.bf16.msra.mxu0 %v1953_v46  ;;  %1218 = vmatpush1.bf16.msra.mxu1 %v1956_v47  ;;  %v2031_v46 = vld [vmem:[#allocation3 + $0x3a0] ss:$16 sps:$4 sm:$0xff]   ;;  %v2034_v47 = vld [vmem:[#allocation3 + $0x3a8] ss:$16 sps:$4 sm:$0xff]  }
  0xff   :  { %1133 = vmatprep.subr.bf16.mxu0 %v1961_v50  ;;  %1219 = vmatprep.subr.bf16.mxu1 %v1964_v51  ;;  %v2042_v50 = vld [vmem:[#allocation3 + $0x3cc] ss:$16 sps:$4 sm:$0xff]   ;;  %v2037_v51 = vld [vmem:[#allocation3 + $0x3c0] ss:$16 sps:$4 sm:$0xff]  }
 0x100   :  { %1163 = vmatprep.mubr.bf16.mxu0 %v447_v55  ;;  %1249 = vmatprep.mubr.bf16.mxu1 %v447_v55  ;;  %v2043_v55 = vld [vmem:[#allocation3 + $0x3e0] ss:$16 sps:$4 sm:$0xff]  }
 0x102   :  { %1134 = vmatpush1.bf16.msra.mxu0 %v1959_v53  ;;  %1220 = vmatpush1.bf16.msra.mxu1 %v1962_v54  ;;  %v432_v53 = vrot.slane %v427_v48, %v2207_v25  ;;  %v2048_v54 = vld [vmem:[#allocation3 + $0x3ec] ss:$16 sps:$4 sm:$0xff]  }
 0x103   :  { %1135 = vmatprep.subr.bf16.mxu0 %v1967_v56  ;;  %1221 = vmatprep.subr.bf16.mxu1 %v1970_v57  ;;  %v2046_v56 = vld [vmem:[#allocation3 + $0x3e8] ss:$16 sps:$4 sm:$0xff]  }
 0x104   :  { %v442_v57 = vadd.bf16 %v432_v53, %v385_v43  ;;  %v2053_v43 = vld [vmem:[%s2348_s5 + $0x48] sm:$0xff]  }
 0x106   :  { %1136 = vmatpush1.bf16.msra.mxu0 %v1965_v58  ;;  %1222 = vmatpush1.bf16.msra.mxu1 %v1968_v59  ;;  %v2049_v58 = vld [vmem:[%s2348_s5 + $0x40] sm:$0xff]   ;;  %v446_v41 = vmax.bf16 %v2108_v1, %v442_v57 }
 0x107   :  { %1137 = vmatprep.subr.bf16.mxu0 %v1973_v60  ;;  %1223 = vmatprep.subr.bf16.mxu1 %v1976_v61  ;;  %v2050_v59 = vld [vmem:[%s2348_s5 + $0xc0] sm:$0xff]   ;;  %v2054_v61 = vld [vmem:[%s2348_s5 + $0xc8] sm:$0xff]  }
 0x108   :  { %v2051_v60 = vld [vmem:[%s2348_s5] sm:$0xff]  }
 0x10a   :  { %1138 = vmatpush1.bf16.msra.mxu0 %v1971_v62  ;;  %1224 = vmatpush1.bf16.msra.mxu1 %v1974_v63  ;;  %v2055_v62 = vld [vmem:[%s2348_s5 + $0x8] sm:$0xff]  }
 0x10b   :  { %1139 = vmatprep.subr.bf16.mxu0 %v1979_v0  ;;  %1225 = vmatprep.subr.bf16.mxu1 %v1982_v2  ;;  %v2056_v63 = vld [vmem:[%s2348_s5 + $0x88] sm:$0xff]   ;;  %v2057_v0 = vld [vmem:[%s2348_s5 + $0x50] sm:$0xff]  }
 0x10c   :  { %v2058_v2 = vld [vmem:[%s2348_s5 + $0xd0] sm:$0xff]  }
 0x10e   :  { %1140 = vmatpush1.bf16.msra.mxu0 %v1977_v3  ;;  %1226 = vmatpush1.bf16.msra.mxu1 %v1980_v4  ;;  %v2059_v3 = vld [vmem:[%s2348_s5 + $0x10] sm:$0xff]  }
 0x10f   :  { %1141 = vmatprep.subr.bf16.mxu0 %v1985_v5  ;;  %1227 = vmatprep.subr.bf16.mxu1 %v1988_v6  ;;  %v2060_v4 = vld [vmem:[%s2348_s5 + $0x90] sm:$0xff]   ;;  %v2061_v5 = vld [vmem:[%s2348_s5 + $0x58] sm:$0xff]  }
 0x110   :  { %v2062_v6 = vld [vmem:[%s2348_s5 + $0xd8] sm:$0xff]  }
 0x112   :  { %1142 = vmatpush1.bf16.msra.mxu0 %v1983_v7  ;;  %1228 = vmatpush1.bf16.msra.mxu1 %v1986_v8  ;;  %v2063_v7 = vld [vmem:[%s2348_s5 + $0x18] sm:$0xff]  }
 0x113   :  { %1143 = vmatprep.subr.bf16.mxu0 %v1991_v9  ;;  %1229 = vmatprep.subr.bf16.mxu1 %v1994_v10  ;;  %v2064_v8 = vld [vmem:[%s2348_s5 + $0x98] sm:$0xff]   ;;  %v2065_v9 = vld [vmem:[%s2348_s5 + $0x60] sm:$0xff]  }
 0x114   :  { %v2066_v10 = vld [vmem:[%s2348_s5 + $0xe0] sm:$0xff]  }
 0x116   :  { %1144 = vmatpush1.bf16.msra.mxu0 %v1989_v11  ;;  %1230 = vmatpush1.bf16.msra.mxu1 %v1992_v12  ;;  %v2067_v11 = vld [vmem:[%s2348_s5 + $0x20] sm:$0xff]  }
 0x117   :  { %1145 = vmatprep.subr.bf16.mxu0 %v1997_v13  ;;  %1231 = vmatprep.subr.bf16.mxu1 %v2000_v14  ;;  %v2068_v12 = vld [vmem:[%s2348_s5 + $0xa0] sm:$0xff]   ;;  %v2069_v13 = vld [vmem:[%s2348_s5 + $0x68] sm:$0xff]  }
 0x118   :  { %v2070_v14 = vld [vmem:[%s2348_s5 + $0xe8] sm:$0xff]  }
 0x11a   :  { %1146 = vmatpush1.bf16.msra.mxu0 %v1995_v15  ;;  %1232 = vmatpush1.bf16.msra.mxu1 %v1998_v16  ;;  %v2071_v15 = vld [vmem:[%s2348_s5 + $0x28] sm:$0xff]  }
 0x11b   :  { %1147 = vmatprep.subr.bf16.mxu0 %v2003_v17  ;;  %1233 = vmatprep.subr.bf16.mxu1 %v2006_v18  ;;  %v2072_v16 = vld [vmem:[%s2348_s5 + $0xa8] sm:$0xff]   ;;  %v2073_v17 = vld [vmem:[%s2348_s5 + $0x70] sm:$0xff]  }
 0x11c   :  { %v2074_v18 = vld [vmem:[%s2348_s5 + $0xf0] sm:$0xff]  }
 0x11e   :  { %1148 = vmatpush1.bf16.msra.mxu0 %v2001_v19  ;;  %1234 = vmatpush1.bf16.msra.mxu1 %v2004_v21  ;;  %v2075_v19 = vld [vmem:[%s2348_s5 + $0x30] sm:$0xff]  }
 0x11f   :  { %1149 = vmatprep.subr.bf16.mxu0 %v2009_v23  ;;  %1235 = vmatprep.subr.bf16.mxu1 %v2012_v24  ;;  %v2076_v21 = vld [vmem:[%s2348_s5 + $0xb0] sm:$0xff]   ;;  %v2077_v23 = vld [vmem:[%s2348_s5 + $0x78] sm:$0xff]  }
 0x120   :  { %v2078_v24 = vld [vmem:[%s2348_s5 + $0xf8] sm:$0xff]  }
 0x122   :  { %1150 = vmatpush1.bf16.msra.mxu0 %v2007_v26  ;;  %1236 = vmatpush1.bf16.msra.mxu1 %v2010_v27  ;;  %v2079_v26 = vld [vmem:[%s2348_s5 + $0x38] sm:$0xff]  }
 0x123   :  { %1151 = vmatprep.subr.bf16.mxu0 %v2015_v28  ;;  %1237 = vmatprep.subr.bf16.mxu1 %v2018_v29  ;;  %v2080_v27 = vld [vmem:[%s2348_s5 + $0xb8] sm:$0xff]   ;;  %v1753_v28 = vld.sshfl [vmem:[%s2347_s4] sm:$0x33 pattern:$0x75316420] }
 0x124   :  { %v1272_v29 = vcombine.high %v1753_v28, %v1753_v28 }
 0x126   :  { %1152 = vmatpush1.bf16.msra.mxu0 %v2013_v30  ;;  %1238 = vmatpush1.bf16.msra.mxu1 %v2016_v31  ;;  %v1279_v30 = vrot.slane %v1753_v28, %v2199_v20  ;;  %v1286_v31 = vrot.slane %v1272_v29, %v2199_v20 }
 0x127   :  { %1153 = vmatprep.subr.bf16.mxu0 %v2021_v32  ;;  %1239 = vmatprep.subr.bf16.mxu1 %v2024_v33 }
 0x128   :  { %v1287_v32 = vcombine.high %v1279_v30, %v1279_v30  ;;  %v1288_v33 = vcombine.high %v1286_v31, %v1286_v31 }
 0x12a   :  { %1154 = vmatpush1.bf16.msra.mxu0 %v2019_v34  ;;  %1240 = vmatpush1.bf16.msra.mxu1 %v2022_v35  ;;  %v1290_v34 = vpack.i.b16 %v1279_v30, %v1279_v30  ;;  %v1304_v35 = vpack.i.b16 %v1287_v32, %v1287_v32 }
 0x12b   :  { %1155 = vmatprep.subr.bf16.mxu0 %v2027_v36  ;;  %1241 = vmatprep.subr.bf16.mxu1 %v2030_v38  ;;  %v1297_v36 = vpack.i.b16 %v1286_v31, %v1286_v31  ;;  %v1311_v38 = vpack.i.b16 %v1288_v33, %v1288_v33 }
 0x12d   :  { %v1316_v20 = vrot.slane %v1311_v38, %v2207_v25 }
 0x12e   :  { %1156 = vmatpush1.bf16.msra.mxu0 %v2025_v39  ;;  %1242 = vmatpush1.bf16.msra.mxu1 %v2028_v40 }
 0x12f   :  { %1157 = vmatprep.subr.bf16.mxu0 %v2033_v44  ;;  %1243 = vmatprep.subr.bf16.mxu1 %v2036_v45  ;;  %v1295_v45 = vrot.slane %v1290_v34, %v2207_v25 }
 0x132   :  { %1158 = vmatpush1.bf16.msra.mxu0 %v2031_v46  ;;  %1244 = vmatpush1.bf16.msra.mxu1 %v2034_v47  ;;  %v1309_v46 = vrot.slane %v1304_v35, %v2207_v25 }
 0x133   :  { %1159 = vmatprep.subr.bf16.mxu0 %v2039_v49  ;;  %1245 = vmatprep.subr.bf16.mxu1 %v2042_v50  ;;  %v1302_v49 = vrot.slane %v1297_v36, %v2207_v25 }
 0x136   :  { %1160 = vmatpush1.bf16.msra.mxu0 %v2037_v51  ;;  %1246 = vmatpush1.bf16.msra.mxu1 %v2040_v52 }
 0x137   :  { %1161 = vmatprep.subr.bf16.mxu0 %v2045_v22  ;;  %1247 = vmatprep.subr.bf16.mxu1 %v2048_v54 }
 0x13a   :  { %1162 = vmatpush1.bf16.msra.mxu0 %v2043_v55  ;;  %1248 = vmatpush1.bf16.msra.mxu1 %v2046_v56 }
 0x13b   :  { %1787 = vmatprep.subr.bf16.mxu0 %v2049_v58  ;;  %1809 = vmatprep.subr.bf16.mxu1 %v2050_v59 }
 0x13d   :  { %1164 = vmatmul.mubr.bf16.vlgmr.msra.gmra.mrb[4].mxu0 %v446_v41  ;;  %1250 = vmatmul.mubr.bf16.vlgmr.msra.gmra.mrb[4].mxu1 %v446_v41 }
 0x13e   :  { %1788 = vmatpush3.bf16.msra.mxu0 %v2051_v60  ;;  %1810 = vmatpush3.bf16.msra.mxu1 %v2052_v37 }
 0x13f   :  { %1789 = vmatprep.subr.bf16.mxu0 %v2053_v43  ;;  %1811 = vmatprep.subr.bf16.mxu1 %v2054_v61  ;;  %v1754_v61 = vld [vmem:[#allocation2] ss:$0 sm:$0xff] }
 0x142   :  { %1790 = vmatpush3.bf16.msra.mxu0 %v2055_v62  ;;  %1812 = vmatpush3.bf16.msra.mxu1 %v2056_v63 }
 0x143   :  { %1791 = vmatprep.subr.bf16.mxu0 %v2057_v0  ;;  %1813 = vmatprep.subr.bf16.mxu1 %v2058_v2 }
 0x146   :  { %1792 = vmatpush3.bf16.msra.mxu0 %v2059_v3  ;;  %1814 = vmatpush3.bf16.msra.mxu1 %v2060_v4 }
 0x147   :  { %1793 = vmatprep.subr.bf16.mxu0 %v2061_v5  ;;  %1815 = vmatprep.subr.bf16.mxu1 %v2062_v6 }
 0x14a   :  { %1794 = vmatpush3.bf16.msra.mxu0 %v2063_v7  ;;  %1816 = vmatpush3.bf16.msra.mxu1 %v2064_v8 }
 0x14b   :  { %1795 = vmatprep.subr.bf16.mxu0 %v2065_v9  ;;  %1817 = vmatprep.subr.bf16.mxu1 %v2066_v10 }
 0x14e   :  { %1796 = vmatpush3.bf16.msra.mxu0 %v2067_v11  ;;  %1818 = vmatpush3.bf16.msra.mxu1 %v2068_v12 }
 0x14f   :  { %1797 = vmatprep.subr.bf16.mxu0 %v2069_v13  ;;  %1819 = vmatprep.subr.bf16.mxu1 %v2070_v14 }
 0x152   :  { %1798 = vmatpush3.bf16.msra.mxu0 %v2071_v15  ;;  %1820 = vmatpush3.bf16.msra.mxu1 %v2072_v16 }
 0x153   :  { %1799 = vmatprep.subr.bf16.mxu0 %v2073_v17  ;;  %1821 = vmatprep.subr.bf16.mxu1 %v2074_v18 }
 0x156   :  { %1800 = vmatpush3.bf16.msra.mxu0 %v2075_v19  ;;  %1822 = vmatpush3.bf16.msra.mxu1 %v2076_v21 }
 0x157   :  { %1801 = vmatprep.subr.bf16.mxu0 %v2077_v23  ;;  %1823 = vmatprep.subr.bf16.mxu1 %v2078_v24 }
 0x15a   :  { %1802 = vmatpush3.bf16.msra.mxu0 %v2079_v26  ;;  %1824 = vmatpush3.bf16.msra.mxu1 %v2080_v27 }
 0x210   :  { %v1165_v39 = vpop.f32.mrb[4].mxu0  ;;  %v1251_v40 = vpop.f32.mrb[4].mxu1 }
 0x211   :  { %v1167_v42 = vpop.f32.mrb[5].mxu0  ;;  %v1253_v44 = vpop.f32.mrb[5].mxu1 }
 0x212   :  { %v1169_v47 = vpop.f32.mrb[6].mxu0  ;;  %v1255_v48 = vpop.f32.mrb[6].mxu1 }
 0x213   :  { %v1260_v50 = vpack.c.bf16 %v1169_v47, %v1165_v39  ;;  %v1262_v51 = vpack.c.bf16 %v1255_v48, %v1251_v40  ;;  %v1171_v52 = vpop.f32.mrb[7].mxu0  ;;  %v1257_v53 = vpop.f32.mrb[7].mxu1 }
 0x214   :  { %v1261_v22 = vpack.c.bf16 %v1171_v52, %v1167_v42  ;;  %v1263_v54 = vpack.c.bf16 %v1257_v53, %v1253_v44 }
 0x215   :  { %v1317_v55 = vadd.bf16 %v1295_v45, %v1260_v50  ;;  %v1319_v56 = vadd.bf16 %v1309_v46, %v1262_v51 }
 0x216   :  { %v1318_v57 = vadd.bf16 %v1302_v49, %v1261_v22  ;;  %v1320_v58 = vadd.bf16 %v1316_v20, %v1263_v54 }
 0x217   :  { %v1321_v37 = vmax.bf16 %v2108_v1, %v1317_v55  ;;  %v1323_v41 = vmax.bf16 %v2108_v1, %v1319_v56 }
 0x218   :  { %v1322_v59 = vmax.bf16 %v2108_v1, %v1318_v57  ;;  %v1324_v60 = vmax.bf16 %v2108_v1, %v1320_v58 }
 0x21a   :  { %1555 = vmatprep.mubr.bf16.mxu0 %v1322_v59  ;;  %1596 = vmatprep.mubr.bf16.mxu1 %v1324_v60 }
 0x21b   :  { %1556 = vmatmul.mubr.bf16.vlgmr.msra.gmra.mrb[8].mxu0 %v1321_v37  ;;  %1597 = vmatmul.mubr.bf16.vlgmr.msra.gmra.mrb[8].mxu1 %v1323_v41 }
 0x2ee   :  { %v1803_v25 = vpop.f32.mrb[8].mxu0  ;;  %v1825_v43 = vpop.f32.mrb[8].mxu1 }
 0x2ef   :  { %v1804_v62 = vpop.f32.mrb[9].mxu0  ;;  %v1826_v63 = vpop.f32.mrb[9].mxu1 }
 0x2f0   :  { %v1805_v0 = vadd.f32 %v1804_v62, %v1803_v25  ;;  %v1827_v2 = vadd.f32 %v1826_v63, %v1825_v43  ;;  %v1806_v3 = vpop.f32.mrb[10].mxu0  ;;  %v1828_v4 = vpop.f32.mrb[10].mxu1 }
 0x2f1   :  { %v1807_v5 = vpop.f32.mrb[11].mxu0  ;;  %v1829_v6 = vpop.f32.mrb[11].mxu1 }
 0x2f2   :  { %v1558_v7 = vadd.f32 %v1805_v0, %v1754_v61  ;;  %v1808_v8 = vadd.f32 %v1807_v5, %v1806_v3  ;;  %v1830_v9 = vadd.f32 %v1829_v6, %v1828_v4 }
 0x2f4   :  { %v1599_v1 = vadd.f32 %v1827_v2, %v1558_v7  ;;  %v1561_v10 = vadd.f32 %v1808_v8, %v1754_v61 }
 0x2f6   :  { %1606 = vst.msk [vmem:[%s2350_s7] sm:$0xff] %vm1605_vm1, %v1599_v1  ;;  %v1602_v11 = vadd.f32 %v1830_v9, %v1561_v10 }
 0x2f8   :  { %1607 = vst.msk [vmem:[%s2350_s7 + $0x8] sm:$0xff] %vm1605_vm1, %v1602_v11 }
 0x2f9   :  { %1612 = vsyncpa [#allocation4], 1 }

</bundles_post_ra>
